<compile_context>
chip_gen: v5e
topology: v5e:2x2
jax: 0.10.0
libtpu: 0.0.40
codegen_flags: <defaults>
</compile_context>

<pallas_src>
import jax
import jax.numpy as jnp
from jax.experimental import pallas as pl
from jax.experimental.pallas import tpu as pltpu


def _attention_kernel(qf_ref, wq_ref, kp_ref, v_ref, out_ref):
    # qf_ref : (TB*S, enc_hid)   bf16  flattened encoder outputs for TB batches
    # wq_ref : (enc_hid, dec_hid) bf16  query part of the Linear weight (resident)
    # kp_ref : (TB, dec_hid)      f32   precomputed key @ Wk^T + bias
    # v_ref  : (1, dec_hid)       f32   scoring vector (resident)
    # out_ref: (TB, S)            f32   softmax attention weights
    tb, s = out_ref.shape
    d = wq_ref.shape[1]

    # One full-height MXU pass over the whole row tile (bf16 x bf16 -> f32 acc).
    q_proj = jnp.dot(qf_ref[...], wq_ref[...],
                     preferred_element_type=jnp.float32)            # (TB*S, d)

    # Broadcast the hoisted key projection over S and apply tanh (VPU/EUP), f32.
    energy = jnp.tanh(q_proj.reshape(tb, s, d) + kp_ref[...][:, None, :])

    # scores[b, s] = sum_d v[d] * energy[b, s, d]  (VPU multiply + lane reduce).
    scores = jnp.sum(energy * v_ref[...][None, :, :], axis=-1)      # (TB, S)

    # Numerically-stable softmax over S (per batch row); exact normalization.
    m = jnp.max(scores, axis=-1, keepdims=True)
    e = jnp.exp(scores - m)
    denom = jnp.sum(e, axis=-1, keepdims=True)
    out_ref[...] = (e / denom).astype(out_ref.dtype)


def additive_attention(key, queries, wk_t, wq_t, attn_bias, v, *,
                       target_tile_bytes=2 << 20,
                       vmem_limit_bytes=32 * 1024 * 1024):
    """key: [B, dec_hid]; queries: [B, S, enc_hid];
    wk_t: [dec_hid, dec_hid] = attn_weight[:, :dec_hid].T (pre-transposed once);
    wq_t: [enc_hid, dec_hid] = attn_weight[:, dec_hid:].T (pre-transposed once);
    attn_bias: [dec_hid]; v: [dec_hid]  ->  returns [B, S] softmax weights."""
    B, dec_hid = key.shape
    _, S, enc_hid = queries.shape

    # Hoisted key projection: tiny (B, dec_hid) x (dec_hid, dec_hid) matmul, done
    # once outside the kernel grid (f32 for accuracy; negligible traffic).
    key_proj = (jnp.dot(key, wk_t, preferred_element_type=jnp.float32)
                + attn_bias).astype(jnp.float32)                    # (B, dec_hid)

    # Dominant HBM stream in bf16. In a real pipeline the encoder should emit
    # bf16 directly, making this cast a no-op; here it is done once per call.
    q_flat = queries.reshape(B * S, enc_hid)                        # free reshape
    if q_flat.dtype != jnp.bfloat16:
        q_flat = q_flat.astype(jnp.bfloat16)
    wq_bf = wq_t.astype(jnp.bfloat16)

    # ---- Tile selection: VMEM-budget driven (valid for v5e/v6e/v7x) ----
    bytes_per_batch = S * enc_hid * q_flat.dtype.itemsize
    tb = max(1, int(target_tile_bytes) // max(bytes_per_batch, 1))
    if B >= 16:
        # v7x has 2 TensorCores: keep at least 2 parallel tiles in the grid.
        half = -(-B // 2)
        half = -(-half // 8) * 8
        tb = min(tb, half)
    if tb < B:
        tb = max(8, (tb // 8) * 8)        # sublane-friendly tile height
    tb = min(tb, B)
    n_tiles = pl.cdiv(B, tb)
    # Note: no jnp.pad of `queries` — if tb does not divide B, the last tile's
    # out-of-bounds reads feed only their own (discarded) rows and its
    # out-of-bounds writes are masked by Pallas.

    kp = key_proj                                      # (B, dec_hid) dense 2D
    v2 = v.reshape(1, dec_hid).astype(jnp.float32)     # (1, dec_hid)

    rows = B * S
    cost = pl.CostEstimate(
        flops=2 * rows * enc_hid * dec_hid,
        transcendentals=rows * (dec_hid + 1),          # tanh + softmax exp
        bytes_accessed=(q_flat.size * q_flat.dtype.itemsize
                        + wq_bf.size * wq_bf.dtype.itemsize
                        + kp.size * 4 + v2.size * 4 + rows * 4))

    out = pl.pallas_call(
        _attention_kernel,
        out_shape=jax.ShapeDtypeStruct((B, S), jnp.float32),
        grid_spec=pltpu.PrefetchScalarGridSpec(
            num_scalar_prefetch=0,
            grid=(n_tiles,),
            in_specs=[
                # Streamed, double-buffered q tile (the only big HBM stream).
                pl.BlockSpec((tb * S, enc_hid), lambda i: (i, 0)),
                # Grid-invariant weight: whole-array VMEM resident (single copy).
                pl.BlockSpec(memory_space=pltpu.MemorySpace.VMEM),
                # Per-tile key projections, dense 2D (no sublane-padded size-1 dim).
                pl.BlockSpec((tb, dec_hid), lambda i: (i, 0)),
                # Grid-invariant scoring vector: VMEM resident.
                pl.BlockSpec(memory_space=pltpu.MemorySpace.VMEM),
            ],
            out_specs=pl.BlockSpec((tb, S), lambda i: (i, 0)),
        ),
        compiler_params=pltpu.CompilerParams(
            dimension_semantics=("parallel",),
            vmem_limit_bytes=vmem_limit_bytes),
        cost_estimate=cost,
    )(q_flat, wq_bf, kp, v2)

    return out


def _reference(key, queries, attn_weight, attn_bias, v):
    """Pure-JAX (f32) mirror of the PyTorch forward for verification."""
    B, S, _ = queries.shape
    key_rep = jnp.broadcast_to(key[:, None, :], (B, S, key.shape[-1]))
    cat = jnp.concatenate([key_rep, queries], axis=2)
    energy = jnp.tanh(cat @ attn_weight.T + attn_bias)       # [B, S, dec_hid]
    scores = jnp.einsum('d,bsd->bs', v, energy)              # [B, S]
    return jax.nn.softmax(scores, axis=1)


if __name__ == "__main__":
    B, S = 2, 8
    enc_hid, dec_hid = 32, 32

    k0, k1, k2, k3, k4 = jax.random.split(jax.random.PRNGKey(0), 5)

    # Deterministic synthetic parameters (shapes follow nn.Linear / nn.Parameter).
    fan_in = enc_hid + dec_hid
    bound = 1.0 / jnp.sqrt(fan_in)
    attn_weight = jax.random.uniform(k0, (dec_hid, fan_in),
                                     minval=-bound, maxval=bound,
                                     dtype=jnp.float32)
    attn_bias = jax.random.uniform(k1, (dec_hid,),
                                   minval=-bound, maxval=bound,
                                   dtype=jnp.float32)
    v_param = jax.random.uniform(k2, (dec_hid,), dtype=jnp.float32)  # torch.rand

    key = jax.random.normal(k3, (B, dec_hid), dtype=jnp.float32)
    queries = jax.random.normal(k4, (B, S, enc_hid), dtype=jnp.float32)

    # Parameter setup done ONCE (not per forward call): split the Linear weight
    # for the concat-free formulation and pre-transpose for MXU-friendly matmuls.
    wk_t = attn_weight[:, :dec_hid].T            # (dec_hid, dec_hid)
    wq_t = attn_weight[:, dec_hid:].T            # (enc_hid, dec_hid)

    attn_fn = jax.jit(additive_attention)
    out = attn_fn(key, queries, wk_t, wq_t, attn_bias, v_param)
    out = jax.block_until_ready(out)

    ref = _reference(key, queries, attn_weight, attn_bias, v_param)
    assert out.shape == (B, S)
    # Tolerance allows for the bf16 cast of the q stream / weight (matmul still
    # accumulates in f32; tanh/softmax are f32).
    assert jnp.allclose(out, ref, atol=1e-2, rtol=5e-2), "mismatch vs reference"
    # Softmax normalization is exact (plain f32 divide).
    assert jnp.allclose(jnp.sum(out, axis=1), 1.0, atol=1e-4)

    print("KERNEL_OK")
</pallas_src>

<mosaic_0001>
module attributes {stable_mosaic.version = 11 : i64} {
  func.func @_attention_kernel(%arg0: i32, %arg1: memref<16x32xbf16, #tpu.memory_space<vmem>>, %arg2: memref<32x32xbf16, #tpu.memory_space<vmem>>, %arg3: memref<2x32xf32, #tpu.memory_space<vmem>>, %arg4: memref<1x32xf32, #tpu.memory_space<vmem>>, %arg5: memref<2x8xf32, #tpu.memory_space<vmem>>) attributes {dimension_semantics = [#tpu.dimension_semantics<parallel>], iteration_bounds = array<i64: 1>, scalar_prefetch = 0 : i64, scratch_operands = 0 : i64, tpu.core_type = #tpu.core_type<tc>, window_params = [{transform_indices = @transform_0, window_bounds = array<i64: 16, 32>}, {pipeline_mode = #tpu.pipeline_mode<synchronous>, transform_indices = @transform_1, window_bounds = array<i64: 32, 32>}, {transform_indices = @transform_2, window_bounds = array<i64: 2, 32>}, {pipeline_mode = #tpu.pipeline_mode<synchronous>, transform_indices = @transform_3, window_bounds = array<i64: 1, 32>}, {transform_indices = @transform_4, window_bounds = array<i64: 2, 8>}]} {
    %c0 = arith.constant 0 : index
    %c0_0 = arith.constant 0 : index
    %0 = vector.load %arg1[%c0, %c0_0] : memref<16x32xbf16, #tpu.memory_space<vmem>>, vector<16x32xbf16>
    %c0_1 = arith.constant 0 : index
    %c0_2 = arith.constant 0 : index
    %1 = vector.load %arg2[%c0_1, %c0_2] : memref<32x32xbf16, #tpu.memory_space<vmem>>, vector<32x32xbf16>
    %cst = arith.constant dense<0.000000e+00> : vector<16x32xf32>
    %2 = tpu.matmul %0, %1, %cst {dimension_numbers = #tpu.dot_dimension_numbers<[1], [0], [0], [1], [0, 0, 1, 1], [], []>} : vector<16x32xbf16>, vector<32x32xbf16>, vector<16x32xf32> -> vector<16x32xf32>
    %3 = vector.shape_cast %2 : vector<16x32xf32> to vector<2x8x32xf32>
    %c0_3 = arith.constant 0 : index
    %c0_4 = arith.constant 0 : index
    %4 = vector.load %arg3[%c0_3, %c0_4] : memref<2x32xf32, #tpu.memory_space<vmem>>, vector<2x32xf32>
    %5 = vector.shape_cast %4 : vector<2x32xf32> to vector<2x1x32xf32>
    %6 = vector.broadcast %5 : vector<2x1x32xf32> to vector<2x8x32xf32>
    %7 = arith.addf %3, %6 : vector<2x8x32xf32>
    %8 = math.tanh %7 : vector<2x8x32xf32>
    %c0_5 = arith.constant 0 : index
    %c0_6 = arith.constant 0 : index
    %9 = vector.load %arg4[%c0_5, %c0_6] : memref<1x32xf32, #tpu.memory_space<vmem>>, vector<1x32xf32>
    %10 = vector.shape_cast %9 : vector<1x32xf32> to vector<1x1x32xf32>
    %11 = vector.broadcast %10 : vector<1x1x32xf32> to vector<2x8x32xf32>
    %12 = arith.mulf %8, %11 : vector<2x8x32xf32>
    %cst_7 = arith.constant dense<0.000000e+00> : vector<2x8xf32>
    %13 = vector.multi_reduction <add>, %12, %cst_7 [2] : vector<2x8x32xf32> to vector<2x8xf32>
    %cst_8 = arith.constant dense<0xFF800000> : vector<2xf32>
    %14 = vector.multi_reduction <maximumf>, %13, %cst_8 [1] : vector<2x8xf32> to vector<2xf32>
    %15 = vector.shape_cast %14 : vector<2xf32> to vector<2x1xf32>
    %16 = vector.broadcast %15 : vector<2x1xf32> to vector<2x8xf32>
    %17 = arith.subf %13, %16 : vector<2x8xf32>
    %18 = math.exp %17 : vector<2x8xf32>
    %cst_9 = arith.constant dense<0.000000e+00> : vector<2xf32>
    %19 = vector.multi_reduction <add>, %18, %cst_9 [1] : vector<2x8xf32> to vector<2xf32>
    %20 = vector.shape_cast %19 : vector<2xf32> to vector<2x1xf32>
    %21 = vector.broadcast %20 : vector<2x1xf32> to vector<2x8xf32>
    %22 = arith.divf %18, %21 : vector<2x8xf32>
    %c0_10 = arith.constant 0 : index
    %c0_11 = arith.constant 0 : index
    %23 = vector.load %arg5[%c0_10, %c0_11] : memref<2x8xf32, #tpu.memory_space<vmem>>, vector<2x8xf32>
    tpu.vector_store %arg5[%c0_10, %c0_11], %22 {strides = array<i32>} : memref<2x8xf32, #tpu.memory_space<vmem>>, vector<2x8xf32>,
    return
  }
  func.func @transform_0(%arg0: i32) -> (i32, i32) {
    %c0_i32 = arith.constant 0 : i32
    %c0_i32_0 = arith.constant 0 : i32
    return %arg0, %c0_i32 : i32, i32
  }
  func.func @transform_1(%arg0: i32) -> (i32, i32) {
    %c0_i32 = arith.constant 0 : i32
    %c0_i32_0 = arith.constant 0 : i32
    %c0_i32_1 = arith.constant 0 : i32
    return %c0_i32, %c0_i32_0 : i32, i32
  }
  func.func @transform_2(%arg0: i32) -> (i32, i32) {
    %c0_i32 = arith.constant 0 : i32
    %c0_i32_0 = arith.constant 0 : i32
    return %arg0, %c0_i32 : i32, i32
  }
  func.func @transform_3(%arg0: i32) -> (i32, i32) {
    %c0_i32 = arith.constant 0 : i32
    %c0_i32_0 = arith.constant 0 : i32
    %c0_i32_1 = arith.constant 0 : i32
    return %c0_i32, %c0_i32_0 : i32, i32
  }
  func.func @transform_4(%arg0: i32) -> (i32, i32) {
    %c0_i32 = arith.constant 0 : i32
    %c0_i32_0 = arith.constant 0 : i32
    return %arg0, %c0_i32 : i32, i32
  }
}

</mosaic_0001>

<bundles_post_ra>
// kernel: additive_attention.1
= control target key start
LH: loop header
LB: loop body
LE: loop exit
PB: predicated region body
PF: predicated region fallthrough
CT: control target
= control target key end

     0   :  { %s308_s0 = inlined_call_operand.vmem [shape: bf16[16,32], index: 0, kind: input, shape index: {}]   ;;  %s309_s1 = inlined_call_operand.vmem [shape: bf16[32,32], index: 1, kind: input, shape index: {}]   ;;  %s310_s2 = inlined_call_operand.vmem [shape: f32[2,32], index: 2, kind: input, shape index: {}]   ;;  %s311_s3 = inlined_call_operand.vmem [shape: f32[1,32], index: 3, kind: input, shape index: {}]   ;;  %s312_s4 = inlined_call_operand.hbm [shape: f32[2,8], index: 4, kind: output, shape index: {}]  }
   0x1   :  { %v201_v0 = vld [vmem:[%s309_s1 + $0x8] sm:$0xff] }
   0x2   :  { %9 = vsyncpa [#allocation3], 0  ;;  %52 = vmatpush.bf16.msra.mxu0 %v201_v0  ;;  %v200_v1 = vld [vmem:[%s309_s1] sm:$0xff]  ;;  %vm42_vm0 = vcmask 261120   ;;  %v85_v19 = vlaneseq  ;;  %vm89_vm1 = vcmask 1041409   ;;  %vm92_vm2 = vcmask 58368  }
   0x3   :  { %v199_v2 = vld [vmem:[%s308_s0] sm:$0xff]  ;;  %v246_v26 = vmov 0   ;;  %s247_s0 = smov [#allocation2]   ;;  %s177_s25 = sshll.u32 %s312_s4, 4  ;;  %s178_s25 = int_to_ptr.hbm [resolvable:$true] %s177_s25 }
   0x4   :  { %v60_v3 = vld [vmem:[%s310_s2] sm:$0x3]  ;;  %v291_v20 = vand.u32 127, %v85_v19  ;;  %205 = vset.pattern.permute.xlu2 %v246_v26  ;;  %204 = vset.pattern.permute.xlu1 %v246_v26  ;;  %s175_s2 = sshll.u32 %s247_s0, 4  ;;  %s176_s2 = int_to_ptr.vmem [resolvable:$true] %s175_s2 }
   0x5   :  { %v63_v4 = vperm.slane %v60_v3, 0  ;;  %v62_v7 = vrot.slane %v60_v3, 1  ;;  %v207_v9 = vld [vmem:[%s311_s3] ss:$0 sm:$0xff]  ;;  %206 = vset.pattern.permute.xlu0 %v246_v26 }
   0x6   :  { %53 = vmatpush.bf16.msra.mxu0 %v200_v1 }
   0x7   :  { %v64_v8 = vperm.slane %v62_v7, 0 }
   0x9   :  { %198 = vmatmul.msk.bf16.vlgmr.msra.gmra.mxu0 %vm42_vm0, %v199_v2 }
  0x86   :  { %v55_v5 = vpop.f32.mrf.mxu0 }
  0x87   :  { %v67_v6 = vadd.f32 %v63_v4, %v55_v5 }
  0x89   :  { %208 = vtanh.f32 %v67_v6 }
  0x8e   :  { %v57_v10 = vpop.f32.mrf.mxu0 }
  0x8f   :  { %v209_v11 = vpop.eup %208  ;;  %v68_v12 = vadd.f32 %v64_v8, %v57_v10 }
  0x90   :  { %v75_v13 = vmul.f32 %v209_v11, %v207_v9 }
  0x91   :  { %210 = vtanh.f32 %v68_v12 }
  0x92   :  { %v77_v14 = vsel %vm42_vm0, %v75_v13, 0.0 }
  0x93   :  { %78 = vadd.xlane.f32.xlu0 %v77_v14 }
  0x97   :  { %v211_v15 = vpop.eup %210 }
  0x98   :  { %v76_v16 = vmul.f32 %v211_v15, %v207_v9 }
  0x9a   :  { %v80_v17 = vsel %vm42_vm0, %v76_v16, 0.0 }
  0x9b   :  { %81 = vadd.xlane.f32.xlu0 %v80_v17 }
 0x106   :  { %v79_v18 = vpop.xlane.xlu0 %78 }
 0x107   :  { %v87_v22 = vperm.slane %v79_v18, %v291_v20 }
 0x10e   :  { %v82_v21 = vpop.xlane.xlu0 %81 }
 0x10f   :  { %v88_v23 = vperm.slane %v82_v21, %v291_v20 }
 0x111   :  { %v90_v24 = vsel %vm89_vm1, %v88_v23, %v87_v22 }
 0x112   :  { %v93_v25 = vsel %vm92_vm2, %v90_v24, -inf }
 0x113   :  { %94 = vmax.xlane.f32.xlu1 %v93_v25 }
 0x186   :  { %v95_v27 = vpop.xlane.xlu1 %94 }
 0x187   :  { %v97_v28 = vperm.slane %v95_v27, 0  ;;  %v98_v29 = vperm.slane %v95_v27, 1 }
 0x189   :  { %v101_v30 = vsub.f32 %v79_v18, %v97_v28  ;;  %v102_v31 = vsub.f32 %v82_v21, %v98_v29 }
 0x18b   :  { %v103_v32 = vmul.f32 1.442695, %v101_v30  ;;  %v105_v33 = vmul.f32 1.442695, %v102_v31 }
 0x18d   :  { %212 = vpow2.f32 %v103_v32 }
 0x18e   :  { %214 = vpow2.f32 %v105_v33 }
 0x193   :  { %v213_v34 = vpop.eup %212 }
 0x194   :  { %v215_v35 = vpop.eup %214  ;;  %110 = vperm.xlu1 %204, %v213_v34  }
 0x195   :  { %113 = vperm.xlu2 %205, %v215_v35  }
 0x1ef   :  { %v114_v36 = vpop.permute.xlu2 %113 }
 0x1f0   :  { %v116_v38 = vperm.slane %v114_v36, %v291_v20 }
 0x206   :  { %v111_v37 = vpop.permute.xlu1 %110 }
 0x207   :  { %v115_v39 = vperm.slane %v111_v37, %v291_v20 }
 0x209   :  { %v117_v40 = vsel %vm89_vm1, %v116_v38, %v115_v39 }
 0x20a   :  { %v119_v41 = vsel %vm92_vm2, %v117_v40, 0.0 }
 0x20b   :  { %120 = vadd.xlane.f32.xlu2 %v119_v41 }
 0x27e   :  { %v121_v42 = vpop.xlane.xlu2 %120 }
 0x27f   :  { %v123_v43 = vperm.slane %v121_v42, 0  ;;  %v124_v44 = vperm.slane %v121_v42, 1 }
 0x281   :  { %216 = vrcp.f32 %v123_v43  ;;  %v138_v51 = vand.u32 2147483648, %v123_v43  ;;  %v153_v52 = vand.u32 2147483648, %v124_v44  ;;  %v136_v54 = vand.u32 2147483647, %v123_v43 }
 0x282   :  { %218 = vrcp.f32 %v124_v44  ;;  %v151_v56 = vand.u32 2147483647, %v124_v44  ;;  %vm132_vm5 = vweird.f32 %v123_v43  ;;  %vm147_vm6 = vweird.f32 %v124_v44 }
 0x283   :  { %v139_v59 = vor.u32 1.1754944e-38, %v138_v51  ;;  %v154_v60 = vor.u32 1.1754944e-38, %v153_v52  ;;  %vm137_vm9 = vcmp.eq.f32.partialorder %v136_v54, 8.507059e+37 }
 0x284   :  { %vm152_vm10 = vcmp.eq.f32.partialorder %v151_v56, 8.507059e+37 }
 0x287   :  { %v217_v45 = vpop.eup %216 }
 0x288   :  { %v219_v46 = vpop.eup %218  ;;  %v128_v47 = vmul.f32 %v217_v45, %v123_v43  ;;  %vm133_vm3 = vweird.f32 %v217_v45 }
 0x289   :  { %v143_v48 = vmul.f32 %v219_v46, %v124_v44  ;;  %vm148_vm4 = vweird.f32 %v219_v46  ;;  %vm134_vm7 = vmor %vm132_vm5, %vm133_vm3 }
 0x28a   :  { %v129_v49 = vsub.f32 1.0, %v128_v47  ;;  %vm149_vm8 = vmor %vm147_vm6, %vm148_vm4 }
 0x28b   :  { %v144_v50 = vsub.f32 1.0, %v143_v48 }
 0x28c   :  { %v130_v53 = vmul.f32 %v217_v45, %v129_v49 }
 0x28d   :  { %v145_v55 = vmul.f32 %v219_v46, %v144_v50 }
 0x28e   :  { %v131_v57 = vadd.f32 %v217_v45, %v130_v53 }
 0x28f   :  { %v146_v58 = vadd.f32 %v219_v46, %v145_v55 }
 0x290   :  { %v135_v61 = vsel %vm134_vm7, %v217_v45, %v131_v57 }
 0x291   :  { %v150_v62 = vsel %vm149_vm8, %v219_v46, %v146_v58  ;;  %v140_v63 = vsel %vm137_vm9, %v139_v59, %v135_v61 }
 0x292   :  { %v155_v0 = vsel %vm152_vm10, %v154_v60, %v150_v62  ;;  %v141_v1 = vmul.f32 %v213_v34, %v140_v63 }
 0x293   :  { %v156_v2 = vmul.f32 %v215_v35, %v155_v0 }
 0x294   :  { %160 = vperm.xlu0 %206, %v141_v1  }
 0x295   :  { %163 = vperm.xlu1 %204, %v156_v2  }
 0x306   :  { %v161_v3 = vpop.permute.xlu0 %160 }
 0x307   :  { %v164_v4 = vpop.permute.xlu1 %163  ;;  %v165_v5 = vperm.slane %v161_v3, %v291_v20 }
 0x308   :  { %v166_v6 = vperm.slane %v164_v4, %v291_v20 }
 0x30a   :  { %v167_v7 = vsel %vm89_vm1, %v166_v6, %v165_v5 }
 0x30b   :  { %169 = vst.msk [vmem:[#allocation2] sm:$0x3] %vm92_vm2, %v167_v7 }
 0x30c   :  { %180 = dma.vmem_to_hbm [thread:$0]  %s176_s2, 32, %s178_s25, [#allocation3]  }
 0x30d   :  { %244 = dma.done.wait [#allocation3], 32  }
 0x30e   :  { %245 = vsyncadd [#allocation3], 4294967264 }
 0x30f   :  { %185 = vsyncpa [#allocation3], 1 }

</bundles_post_ra>
